<compile_context>
chip_gen: v6e
topology: v6e:2x2x1
jax: 0.10.0
libtpu: 0.0.40
codegen_flags: <defaults>
</compile_context>

<pallas_src>
import functools

import jax
import jax.numpy as jnp
from jax import lax
from jax.experimental import pallas as pl
from jax.experimental.pallas import tpu as pltpu

LN_EPS = 1e-5
BN_EPS = 1e-5


# --------------------------------------------------------------------------- #
# Shared in-kernel helpers
# --------------------------------------------------------------------------- #
def _row_mask(lens_ref, g, Bb, T):
    """Length mask (Bb*T, 1) f32 and within-sequence time index (Bb*T, 1) i32,
    built in-kernel from SMEM lengths (no lane-sparse HBM mask stream)."""
    t_col = lax.broadcasted_iota(jnp.int32, (T, 1), 0)
    parts = [(t_col < lens_ref[g * Bb + i]).astype(jnp.float32) for i in range(Bb)]
    mask = parts[0] if Bb == 1 else jnp.concatenate(parts, axis=0)
    t_rows = t_col if Bb == 1 else jnp.concatenate([t_col] * Bb, axis=0)
    return mask, t_rows


# --------------------------------------------------------------------------- #
# Stage 1 kernel: one batch group of M = Bb*T rows
# --------------------------------------------------------------------------- #
def _stage1_kernel(Bb, T, lens_ref, x_ref, ln_g_ref, ln_b_ref, w1_ref, b1_ref,
                   wdw_ref, bdw_ref, mid_ref, stats_ref):
    M, D = x_ref.shape                       # M = Bb * T (batch folded into M)
    E = w1_ref.shape[1]
    Cmid = E // 2
    K = wdw_ref.shape[0] // Cmid
    pad = (K - 1) // 2
    g = pl.program_id(0)
    bf16 = jnp.bfloat16

    mask, t_rows = _row_mask(lens_ref, g, Bb, T)
    x = x_ref[...] * mask                                      # (M, D) f32

    # LayerNorm over the feature dim (f32).
    mu = jnp.mean(x, axis=-1, keepdims=True)
    var = jnp.mean((x - mu) ** 2, axis=-1, keepdims=True)
    xn = (x - mu) * lax.rsqrt(var + LN_EPS) * ln_g_ref[...] + ln_b_ref[...]

    # pointwise_conv_one (1x1 conv == matmul), bf16 operands, f32 accumulation.
    h = jnp.dot(xn.astype(bf16), w1_ref[...],
                preferred_element_type=jnp.float32) + b1_ref[...]   # (M, E)

    # TODO(synk): nn.GLU() default dim=-1 (time after transpose) is shape-
    # incompatible with the following conv; implemented the intended channel GLU.
    u = h[:, :Cmid] * jax.nn.sigmoid(h[:, Cmid:])                   # (M, Cmid)

    # K-tap "same"-padded conv (Cmid -> D) fused into ONE matmul over the
    # flattened (K*Cmid) contraction.  Shifted operands are built with
    # pltpu.roll (XLU slot) on register values; rows whose tap falls outside
    # the sequence (incl. across batch boundaries inside the group / cyclic
    # wrap) are zeroed before the bf16 cast.  No VMEM scratch roundtrip.
    parts = []
    for k in range(K):
        o = k - pad                                   # want shifted[r] = u[r + o]
        if o == 0:
            parts.append(u.astype(bf16))
            continue
        s = pltpu.roll(u, shift=(-o) % M, axis=0)     # jnp.roll semantics
        valid = (t_rows < T - o) if o > 0 else (t_rows >= -o)
        parts.append(jnp.where(valid, s, 0.0).astype(bf16))
    lhs = parts[0] if K == 1 else jnp.concatenate(parts, axis=-1)   # (M, K*Cmid)
    y = jnp.dot(lhs, wdw_ref[...],
                preferred_element_type=jnp.float32) + bdw_ref[...]  # (M, D) f32

    mid_ref[...] = y.astype(mid_ref.dtype)     # bf16 halves inter-stage traffic
    stats_ref[...] = jnp.concatenate(          # single store for the BN partials
        [jnp.sum(y, axis=0, keepdims=True),
         jnp.sum(y * y, axis=0, keepdims=True)], axis=0)


# --------------------------------------------------------------------------- #
# Stage 2 kernel: same batch-group grid
# --------------------------------------------------------------------------- #
def _stage2_kernel(Bb, T, lens_ref, mid_ref, bn_s_ref, bn_t_ref, w2_ref, b2_ref,
                   o_ref):
    g = pl.program_id(0)
    mask, _ = _row_mask(lens_ref, g, Bb, T)
    # Folded BatchNorm affine -> Swish -> pointwise_conv_two -> final mask.
    y = mid_ref[...].astype(jnp.float32) * bn_s_ref[...] + bn_t_ref[...]
    y = y * jax.nn.sigmoid(y)
    out = jnp.dot(y.astype(jnp.bfloat16), w2_ref[...],
                  preferred_element_type=jnp.float32) + b2_ref[...]
    o_ref[...] = out * mask


# --------------------------------------------------------------------------- #
# Wrapper
# --------------------------------------------------------------------------- #
def _pick_batch_group(B, T, target_rows=256, max_rows=1024):
    """Fold whole batches into the matmul M dim: largest divisor Bb of B such
    that M = Bb*T stays under max_rows, stopping once M reaches target_rows."""
    best = 1
    for b in range(1, B + 1):
        if B % b:
            continue
        if b * T > max_rows:
            break
        best = b
        if b * T >= target_rows:
            break
    return best


def _vmem_limit_bytes(working_bytes):
    """Generation-aware VMEM cap: ~3/4 of physical VMEM (≈96 MiB on v5e/v6e,
    ≈48 MiB on v7x), but no more than the tile working set needs."""
    cap = 64 << 20
    try:
        cap = int(pltpu.get_tpu_info().vmem_capacity_bytes)
    except Exception:  # pragma: no cover - info query unavailable
        pass
    budget = (cap * 3) // 4
    want = int(2 * working_bytes) + (16 << 20)
    return int(max(min(want, budget), 32 << 20))


def conv_module_forward(x, lengths, params):
    """x: (B, T, D) float32, lengths: (B,) int -> (B, T, D) float32."""
    B, T, D = x.shape
    assert T % 8 == 0, "T must be a multiple of 8 (sublane tiling)"
    ln_g, ln_b, w1, b1, wdw, bdw, bn_g, bn_b, w2, b2 = params
    K, Cmid, _ = wdw.shape
    E = w1.shape[1]
    assert K % 2 == 1, "odd kernel_size assumed ('same' padding)"
    f32, bf16 = jnp.float32, jnp.bfloat16

    lengths = lengths.astype(jnp.int32)

    # MXU-friendly weight layouts: bf16, K taps flattened onto the contraction.
    w1_bf = w1.astype(bf16)                          # (D, E)
    wdw_bf = wdw.reshape(K * Cmid, D).astype(bf16)   # (K*Cmid, D)
    w2_bf = w2.astype(bf16)                          # (D, D)

    # Both stages run over row groups of M = Bb*T rows (whole batches, so the
    # length mask and the K-tap halo stay batch-local).
    Bb = _pick_batch_group(B, T)
    G = B // Bb
    M = Bb * T
    x_flat = x.reshape(B * T, D)
    mid_dtype = bf16 if M % 16 == 0 else f32   # bf16 blocks want 16-row sublanes

    # TODO(synk): for very long T (group residency near v7x's 64 MiB VMEM), add
    # a T-tile axis with a (K-1)-row halo instead of keeping a full group resident.

    # ---------------- stage 1 ----------------
    s1_bytes = (M * D * 4 + M * D * 2 + 2 * D * 4                    # x in, outs
                + D * E * 2 + K * Cmid * D * 2 + (E + 3 * D) * 4     # weights
                + M * E * 4 + M * Cmid * 4 + M * K * Cmid * 2 + M * D * 4)  # live
    mid_flat, stats = pl.pallas_call(
        functools.partial(_stage1_kernel, Bb, T),
        grid_spec=pltpu.PrefetchScalarGridSpec(
            num_scalar_prefetch=1,                      # lengths -> SMEM
            grid=(G,),
            in_specs=[
                pl.BlockSpec((M, D), lambda g, lens: (g, 0)),          # x rows
                pl.BlockSpec((1, D), lambda g, lens: (0, 0)),          # ln_g
                pl.BlockSpec((1, D), lambda g, lens: (0, 0)),          # ln_b
                pl.BlockSpec((D, E), lambda g, lens: (0, 0)),          # w1 (bf16)
                pl.BlockSpec((1, E), lambda g, lens: (0, 0)),          # b1
                pl.BlockSpec((K * Cmid, D), lambda g, lens: (0, 0)),   # wdw (bf16)
                pl.BlockSpec((1, D), lambda g, lens: (0, 0)),          # bdw
            ],
            out_specs=(
                pl.BlockSpec((M, D), lambda g, lens: (g, 0)),          # mid
                pl.BlockSpec((None, 2, D), lambda g, lens: (g, 0, 0)), # BN partials
            ),
        ),
        out_shape=(jax.ShapeDtypeStruct((B * T, D), mid_dtype),
                   jax.ShapeDtypeStruct((G, 2, D), f32)),
        compiler_params=pltpu.CompilerParams(
            # TODO(synk): on v7x verify "parallel" shards across both TensorCores;
            # if not, switch the leading axis to pltpu.CORE_PARALLEL / pl.core_map.
            dimension_semantics=("parallel",),
            vmem_limit_bytes=_vmem_limit_bytes(s1_bytes)),
    )(lengths, x_flat, ln_g, ln_b, w1_bf, b1, wdw_bf, bdw)

    # BatchNorm (training-mode, over all B*T rows incl. padded ones, matching the
    # reference) folded into a single affine from the tiny (G, 2, D) partials.
    tot = jnp.sum(stats, axis=0)                        # (2, D)
    n = jnp.float32(B * T)
    mean = tot[0] / n
    var = tot[1] / n - mean * mean
    inv_std = lax.rsqrt(var + BN_EPS)
    bn_scale = (bn_g[0] * inv_std)[None, :]                    # (1, D)
    bn_shift = (bn_b[0] - bn_g[0] * inv_std * mean)[None, :]   # (1, D)

    # ---------------- stage 2 ----------------
    s2_bytes = (M * D * 2 + M * D * 4                  # mid in (bf16), out (f32)
                + D * D * 2 + 4 * D * 4                # w2 + small vectors
                + 2 * M * D * 4)                       # live intermediates
    out_flat = pl.pallas_call(
        functools.partial(_stage2_kernel, Bb, T),
        grid_spec=pltpu.PrefetchScalarGridSpec(
            num_scalar_prefetch=1,
            grid=(G,),
            in_specs=[
                pl.BlockSpec((M, D), lambda g, lens: (g, 0)),   # mid rows (bf16)
                pl.BlockSpec((1, D), lambda g, lens: (0, 0)),   # bn_scale
                pl.BlockSpec((1, D), lambda g, lens: (0, 0)),   # bn_shift
                pl.BlockSpec((D, D), lambda g, lens: (0, 0)),   # w2 (bf16)
                pl.BlockSpec((1, D), lambda g, lens: (0, 0)),   # b2
            ],
            out_specs=pl.BlockSpec((M, D), lambda g, lens: (g, 0)),
        ),
        out_shape=jax.ShapeDtypeStruct((B * T, D), f32),
        compiler_params=pltpu.CompilerParams(
            dimension_semantics=("parallel",),
            vmem_limit_bytes=_vmem_limit_bytes(s2_bytes)),
    )(lengths, mid_flat, bn_scale, bn_shift, w2_bf, b2)

    return out_flat.reshape(B, T, D)


# --------------------------------------------------------------------------- #
# Parameters & pure-JAX reference (bf16 matmul operands to mirror the kernel)
# --------------------------------------------------------------------------- #
def init_params(key, D, K, expansion_factor):
    E = D * expansion_factor
    Cmid = E // 2
    ks = jax.random.split(key, 10)
    f32 = jnp.float32
    ln_g = (1.0 + 0.1 * jax.random.normal(ks[0], (1, D))).astype(f32)
    ln_b = (0.05 * jax.random.normal(ks[1], (1, D))).astype(f32)
    w1 = (0.2 * jax.random.normal(ks[2], (D, E))).astype(f32)
    b1 = (0.05 * jax.random.normal(ks[3], (1, E))).astype(f32)
    wdw = (0.2 * jax.random.normal(ks[4], (K, Cmid, D))).astype(f32)
    bdw = (0.05 * jax.random.normal(ks[5], (1, D))).astype(f32)
    bn_g = (1.0 + 0.1 * jax.random.normal(ks[6], (1, D))).astype(f32)
    bn_b = (0.05 * jax.random.normal(ks[7], (1, D))).astype(f32)
    w2 = (0.2 * jax.random.normal(ks[8], (D, D))).astype(f32)
    b2 = (0.05 * jax.random.normal(ks[9], (1, D))).astype(f32)
    return (ln_g, ln_b, w1, b1, wdw, bdw, bn_g, bn_b, w2, b2)


def reference_forward(x, lengths, params):
    B, T, D = x.shape
    ln_g, ln_b, w1, b1, wdw, bdw, bn_g, bn_b, w2, b2 = params
    K, Cmid, _ = wdw.shape
    pad = (K - 1) // 2
    bf16 = jnp.bfloat16

    mask = (jnp.arange(T)[None, :] < lengths[:, None]).astype(jnp.float32)[..., None]
    h = x * mask
    mu = h.mean(-1, keepdims=True)
    var = ((h - mu) ** 2).mean(-1, keepdims=True)
    h = (h - mu) * jax.lax.rsqrt(var + LN_EPS) * ln_g + ln_b
    h = jnp.einsum("btd,de->bte", h.astype(bf16), w1.astype(bf16),
                   preferred_element_type=jnp.float32) + b1
    u = h[..., :Cmid] * jax.nn.sigmoid(h[..., Cmid:])
    up = jnp.pad(u, ((0, 0), (pad, pad), (0, 0)))
    y = sum(jnp.einsum("btc,cd->btd", up[:, k:k + T, :].astype(bf16),
                       wdw[k].astype(bf16), preferred_element_type=jnp.float32)
            for k in range(K)) + bdw
    mu = y.mean((0, 1), keepdims=True)
    var = ((y - mu) ** 2).mean((0, 1), keepdims=True)
    y = (y - mu) * jax.lax.rsqrt(var + BN_EPS) * bn_g + bn_b
    y = y * jax.nn.sigmoid(y)
    out = jnp.einsum("btd,df->btf", y.astype(bf16), w2.astype(bf16),
                     preferred_element_type=jnp.float32) + b2
    return out * mask


if __name__ == "__main__":
    B, T, D = 2, 16, 128          # batch, seq, input_dim (lane-dense feature dim)
    K, expansion_factor = 3, 2    # kernel_size, expansion_factor

    key = jax.random.PRNGKey(0)
    kx, kp = jax.random.split(key, 2)
    x = jax.random.normal(kx, (B, T, D), jnp.float32)
    lengths = jnp.array([T, 11], jnp.int32)   # max length == T (as the forward assumes)

    params = init_params(kp, D, K, expansion_factor)

    out = jax.block_until_ready(conv_module_forward(x, lengths, params))
    ref = reference_forward(x, lengths, params)

    assert out.shape == (B, T, D)
    max_err = float(jnp.max(jnp.abs(out - ref)))
    assert jnp.allclose(out, ref, atol=2e-2, rtol=2e-2), max_err
    print("KERNEL_OK")
</pallas_src>

<mosaic_0001>
module attributes {stable_mosaic.version = 11 : i64} {
  func.func @_stage1_kernel(%arg0: i32, %arg1: memref<2xi32, #tpu.memory_space<smem>>, %arg2: memref<32x128xf32, #tpu.memory_space<vmem>>, %arg3: memref<1x128xf32, #tpu.memory_space<vmem>>, %arg4: memref<1x128xf32, #tpu.memory_space<vmem>>, %arg5: memref<128x256xbf16, #tpu.memory_space<vmem>>, %arg6: memref<1x256xf32, #tpu.memory_space<vmem>>, %arg7: memref<384x128xbf16, #tpu.memory_space<vmem>>, %arg8: memref<1x128xf32, #tpu.memory_space<vmem>>, %arg9: memref<32x128xbf16, #tpu.memory_space<vmem>>, %arg10: memref<1x2x128xf32, #tpu.memory_space<vmem>>) attributes {dimension_semantics = [#tpu.dimension_semantics<parallel>], iteration_bounds = array<i64: 1>, scalar_prefetch = 1 : i64, scratch_operands = 0 : i64, tpu.core_type = #tpu.core_type<tc>, window_params = [{transform_indices = @transform_0, window_bounds = array<i64: 32, 128>}, {pipeline_mode = #tpu.pipeline_mode<synchronous>, transform_indices = @transform_1, window_bounds = array<i64: 1, 128>}, {pipeline_mode = #tpu.pipeline_mode<synchronous>, transform_indices = @transform_2, window_bounds = array<i64: 1, 128>}, {pipeline_mode = #tpu.pipeline_mode<synchronous>, transform_indices = @transform_3, window_bounds = array<i64: 128, 256>}, {pipeline_mode = #tpu.pipeline_mode<synchronous>, transform_indices = @transform_4, window_bounds = array<i64: 1, 256>}, {pipeline_mode = #tpu.pipeline_mode<synchronous>, transform_indices = @transform_5, window_bounds = array<i64: 384, 128>}, {pipeline_mode = #tpu.pipeline_mode<synchronous>, transform_indices = @transform_6, window_bounds = array<i64: 1, 128>}, {transform_indices = @transform_7, window_bounds = array<i64: 32, 128>}, {transform_indices = @transform_8, window_bounds = array<i64: 1, 2, 128>}]} {
    %0 = tpu.iota {dimensions = array<i32: 0>} : vector<16x1xi32>
    %c2_i32 = arith.constant 2 : i32
    %1 = arith.muli %arg0, %c2_i32 : i32
    %c0_i32 = arith.constant 0 : i32
    %2 = arith.addi %1, %c0_i32 : i32
    %3 = arith.index_cast %2 : i32 to index
    %4 = memref.load %arg1[%3] : memref<2xi32, #tpu.memory_space<smem>>
    %5 = vector.broadcast %4 : i32 to vector<16x1xi32>
    %6 = arith.cmpi slt, %0, %5 : vector<16x1xi32>
    %7 = arith.extui %6 : vector<16x1xi1> to vector<16x1xi32>
    %8 = arith.sitofp %7 : vector<16x1xi32> to vector<16x1xf32>
    %c2_i32_0 = arith.constant 2 : i32
    %9 = arith.muli %arg0, %c2_i32_0 : i32
    %c1_i32 = arith.constant 1 : i32
    %10 = arith.addi %9, %c1_i32 : i32
    %11 = arith.index_cast %10 : i32 to index
    %12 = memref.load %arg1[%11] : memref<2xi32, #tpu.memory_space<smem>>
    %13 = vector.broadcast %12 : i32 to vector<16x1xi32>
    %14 = arith.cmpi slt, %0, %13 : vector<16x1xi32>
    %15 = arith.extui %14 : vector<16x1xi1> to vector<16x1xi32>
    %16 = arith.sitofp %15 : vector<16x1xi32> to vector<16x1xf32>
    %17 = tpu.concatenate %8, %16 in 0 : vector<16x1xf32>, vector<16x1xf32> -> vector<32x1xf32>
    %18 = tpu.concatenate %0, %0 in 0 : vector<16x1xi32>, vector<16x1xi32> -> vector<32x1xi32>
    %c0 = arith.constant 0 : index
    %c0_1 = arith.constant 0 : index
    %19 = vector.load %arg2[%c0, %c0_1] : memref<32x128xf32, #tpu.memory_space<vmem>>, vector<32x128xf32>
    %20 = vector.broadcast %17 : vector<32x1xf32> to vector<32x128xf32>
    %21 = arith.mulf %19, %20 : vector<32x128xf32>
    %cst = arith.constant dense<0.000000e+00> : vector<32xf32>
    %22 = vector.multi_reduction <add>, %21, %cst [1] : vector<32x128xf32> to vector<32xf32>
    %23 = vector.shape_cast %22 : vector<32xf32> to vector<32x1xf32>
    %cst_2 = arith.constant 1.280000e+02 : f32
    %24 = vector.broadcast %cst_2 : f32 to vector<32x1xf32>
    %25 = arith.divf %23, %24 : vector<32x1xf32>
    %26 = vector.broadcast %25 : vector<32x1xf32> to vector<32x128xf32>
    %27 = arith.subf %21, %26 : vector<32x128xf32>
    %28 = arith.mulf %27, %27 : vector<32x128xf32>
    %cst_3 = arith.constant dense<0.000000e+00> : vector<32xf32>
    %29 = vector.multi_reduction <add>, %28, %cst_3 [1] : vector<32x128xf32> to vector<32xf32>
    %30 = vector.shape_cast %29 : vector<32xf32> to vector<32x1xf32>
    %cst_4 = arith.constant 1.280000e+02 : f32
    %31 = vector.broadcast %cst_4 : f32 to vector<32x1xf32>
    %32 = arith.divf %30, %31 : vector<32x1xf32>
    %33 = vector.broadcast %25 : vector<32x1xf32> to vector<32x128xf32>
    %34 = arith.subf %21, %33 : vector<32x128xf32>
    %cst_5 = arith.constant 9.99999974E-6 : f32
    %35 = vector.broadcast %cst_5 : f32 to vector<32x1xf32>
    %36 = arith.addf %32, %35 : vector<32x1xf32>
    %37 = math.rsqrt %36 : vector<32x1xf32>
    %38 = vector.broadcast %37 : vector<32x1xf32> to vector<32x128xf32>
    %39 = arith.mulf %34, %38 : vector<32x128xf32>
    %c0_6 = arith.constant 0 : index
    %c0_7 = arith.constant 0 : index
    %40 = vector.load %arg3[%c0_6, %c0_7] : memref<1x128xf32, #tpu.memory_space<vmem>>, vector<1x128xf32>
    %41 = vector.broadcast %40 : vector<1x128xf32> to vector<32x128xf32>
    %42 = arith.mulf %39, %41 : vector<32x128xf32>
    %c0_8 = arith.constant 0 : index
    %c0_9 = arith.constant 0 : index
    %43 = vector.load %arg4[%c0_8, %c0_9] : memref<1x128xf32, #tpu.memory_space<vmem>>, vector<1x128xf32>
    %44 = vector.broadcast %43 : vector<1x128xf32> to vector<32x128xf32>
    %45 = arith.addf %42, %44 : vector<32x128xf32>
    %46 = arith.truncf %45 : vector<32x128xf32> to vector<32x128xbf16>
    %c0_10 = arith.constant 0 : index
    %c0_11 = arith.constant 0 : index
    %47 = vector.load %arg5[%c0_10, %c0_11] : memref<128x256xbf16, #tpu.memory_space<vmem>>, vector<128x256xbf16>
    %cst_12 = arith.constant dense<0.000000e+00> : vector<32x256xf32>
    %48 = tpu.matmul %46, %47, %cst_12 {dimension_numbers = #tpu.dot_dimension_numbers<[1], [0], [0], [1], [0, 0, 1, 1], [], []>} : vector<32x128xbf16>, vector<128x256xbf16>, vector<32x256xf32> -> vector<32x256xf32>
    %c0_13 = arith.constant 0 : index
    %c0_14 = arith.constant 0 : index
    %49 = vector.load %arg6[%c0_13, %c0_14] : memref<1x256xf32, #tpu.memory_space<vmem>>, vector<1x256xf32>
    %50 = vector.broadcast %49 : vector<1x256xf32> to vector<32x256xf32>
    %51 = arith.addf %48, %50 : vector<32x256xf32>
    %52 = vector.extract_strided_slice %51 {offsets = [0, 0], sizes = [32, 128], strides = [1, 1]} : vector<32x256xf32> to vector<32x128xf32>
    %53 = vector.extract_strided_slice %51 {offsets = [0, 128], sizes = [32, 128], strides = [1, 1]} : vector<32x256xf32> to vector<32x128xf32>
    %54 = arith.negf %53 : vector<32x128xf32>
    %55 = math.exp %54 : vector<32x128xf32>
    %cst_15 = arith.constant 1.000000e+00 : f32
    %56 = vector.broadcast %cst_15 : f32 to vector<32x128xf32>
    %57 = arith.addf %56, %55 : vector<32x128xf32>
    %58 = arith.divf %56, %57 : vector<32x128xf32>
    %59 = arith.mulf %52, %58 : vector<32x128xf32>
    %c1_i32_16 = arith.constant 1 : i32
    %60 = tpu.dynamic_rotate %59 by %c1_i32_16 dim 0 : vector<32x128xf32>, i32 -> vector<32x128xf32>
    %c1_i32_17 = arith.constant 1 : i32
    %61 = vector.broadcast %c1_i32_17 : i32 to vector<32x1xi32>
    %62 = arith.cmpi sge, %18, %61 : vector<32x1xi32>
    %cst_18 = arith.constant 0.000000e+00 : f32
    %63 = vector.shape_cast %62 : vector<32x1xi1> to vector<32x1xi1>
    %64 = vector.broadcast %63 : vector<32x1xi1> to vector<32x128xi1>
    %65 = vector.broadcast %cst_18 : f32 to vector<32x128xf32>
    %66 = arith.select %64, %60, %65 : vector<32x128xi1>, vector<32x128xf32>
    %67 = arith.truncf %66 : vector<32x128xf32> to vector<32x128xbf16>
    %68 = arith.truncf %59 : vector<32x128xf32> to vector<32x128xbf16>
    %c31_i32 = arith.constant 31 : i32
    %69 = tpu.dynamic_rotate %59 by %c31_i32 dim 0 : vector<32x128xf32>, i32 -> vector<32x128xf32>
    %c15_i32 = arith.constant 15 : i32
    %70 = vector.broadcast %c15_i32 : i32 to vector<32x1xi32>
    %71 = arith.cmpi slt, %18, %70 : vector<32x1xi32>
    %cst_19 = arith.constant 0.000000e+00 : f32
    %72 = vector.shape_cast %71 : vector<32x1xi1> to vector<32x1xi1>
    %73 = vector.broadcast %72 : vector<32x1xi1> to vector<32x128xi1>
    %74 = vector.broadcast %cst_19 : f32 to vector<32x128xf32>
    %75 = arith.select %73, %69, %74 : vector<32x128xi1>, vector<32x128xf32>
    %76 = arith.truncf %75 : vector<32x128xf32> to vector<32x128xbf16>
    %77 = tpu.concatenate %67, %68, %76 in 1 : vector<32x128xbf16>, vector<32x128xbf16>, vector<32x128xbf16> -> vector<32x384xbf16>
    %c0_20 = arith.constant 0 : index
    %c0_21 = arith.constant 0 : index
    %78 = vector.load %arg7[%c0_20, %c0_21] : memref<384x128xbf16, #tpu.memory_space<vmem>>, vector<384x128xbf16>
    %cst_22 = arith.constant dense<0.000000e+00> : vector<32x128xf32>
    %79 = tpu.matmul %77, %78, %cst_22 {dimension_numbers = #tpu.dot_dimension_numbers<[1], [0], [0], [1], [0, 0, 1, 1], [], []>} : vector<32x384xbf16>, vector<384x128xbf16>, vector<32x128xf32> -> vector<32x128xf32>
    %c0_23 = arith.constant 0 : index
    %c0_24 = arith.constant 0 : index
    %80 = vector.load %arg8[%c0_23, %c0_24] : memref<1x128xf32, #tpu.memory_space<vmem>>, vector<1x128xf32>
    %81 = vector.broadcast %80 : vector<1x128xf32> to vector<32x128xf32>
    %82 = arith.addf %79, %81 : vector<32x128xf32>
    %83 = arith.truncf %82 : vector<32x128xf32> to vector<32x128xbf16>
    %c0_25 = arith.constant 0 : index
    %c0_26 = arith.constant 0 : index
    %84 = vector.load %arg9[%c0_25, %c0_26] : memref<32x128xbf16, #tpu.memory_space<vmem>>, vector<32x128xbf16>
    tpu.vector_store %arg9[%c0_25, %c0_26], %83 {strides = array<i32>} : memref<32x128xbf16, #tpu.memory_space<vmem>>, vector<32x128xbf16>,
    %cst_27 = arith.constant dense<0.000000e+00> : vector<128xf32>
    %85 = vector.multi_reduction <add>, %82, %cst_27 [0] : vector<32x128xf32> to vector<128xf32>
    %86 = vector.shape_cast %85 : vector<128xf32> to vector<1x128xf32>
    %87 = arith.mulf %82, %82 : vector<32x128xf32>
    %cst_28 = arith.constant dense<0.000000e+00> : vector<128xf32>
    %88 = vector.multi_reduction <add>, %87, %cst_28 [0] : vector<32x128xf32> to vector<128xf32>
    %89 = vector.shape_cast %88 : vector<128xf32> to vector<1x128xf32>
    %90 = tpu.concatenate %86, %89 in 0 : vector<1x128xf32>, vector<1x128xf32> -> vector<2x128xf32>
    %c0_29 = arith.constant 0 : index
    %c0_30 = arith.constant 0 : index
    %c0_31 = arith.constant 0 : index
    %91 = vector.load %arg10[%c0_29, %c0_30, %c0_31] : memref<1x2x128xf32, #tpu.memory_space<vmem>>, vector<1x2x128xf32>
    %92 = vector.shape_cast %91 : vector<1x2x128xf32> to vector<2x128xf32>
    %93 = vector.shape_cast %90 : vector<2x128xf32> to vector<1x2x128xf32>
    tpu.vector_store %arg10[%c0_29, %c0_30, %c0_31], %93 {strides = array<i32>} : memref<1x2x128xf32, #tpu.memory_space<vmem>>, vector<1x2x128xf32>,
    return
  }
  func.func @transform_0(%arg0: i32, %arg1: memref<2xi32, #tpu.memory_space<smem>>) -> (i32, i32) {
    %c0_i32 = arith.constant 0 : i32
    %c0_i32_0 = arith.constant 0 : i32
    return %arg0, %c0_i32 : i32, i32
  }
  func.func @transform_1(%arg0: i32, %arg1: memref<2xi32, #tpu.memory_space<smem>>) -> (i32, i32) {
    %c0_i32 = arith.constant 0 : i32
    %c0_i32_0 = arith.constant 0 : i32
    %c0_i32_1 = arith.constant 0 : i32
    return %c0_i32, %c0_i32_0 : i32, i32
  }
  func.func @transform_2(%arg0: i32, %arg1: memref<2xi32, #tpu.memory_space<smem>>) -> (i32, i32) {
    %c0_i32 = arith.constant 0 : i32
    %c0_i32_0 = arith.constant 0 : i32
    %c0_i32_1 = arith.constant 0 : i32
    return %c0_i32, %c0_i32_0 : i32, i32
  }
  func.func @transform_3(%arg0: i32, %arg1: memref<2xi32, #tpu.memory_space<smem>>) -> (i32, i32) {
    %c0_i32 = arith.constant 0 : i32
    %c0_i32_0 = arith.constant 0 : i32
    %c0_i32_1 = arith.constant 0 : i32
    return %c0_i32, %c0_i32_0 : i32, i32
  }
  func.func @transform_4(%arg0: i32, %arg1: memref<2xi32, #tpu.memory_space<smem>>) -> (i32, i32) {
    %c0_i32 = arith.constant 0 : i32
    %c0_i32_0 = arith.constant 0 : i32
    %c0_i32_1 = arith.constant 0 : i32
    return %c0_i32, %c0_i32_0 : i32, i32
  }
  func.func @transform_5(%arg0: i32, %arg1: memref<2xi32, #tpu.memory_space<smem>>) -> (i32, i32) {
    %c0_i32 = arith.constant 0 : i32
    %c0_i32_0 = arith.constant 0 : i32
    %c0_i32_1 = arith.constant 0 : i32
    return %c0_i32, %c0_i32_0 : i32, i32
  }
  func.func @transform_6(%arg0: i32, %arg1: memref<2xi32, #tpu.memory_space<smem>>) -> (i32, i32) {
    %c0_i32 = arith.constant 0 : i32
    %c0_i32_0 = arith.constant 0 : i32
    %c0_i32_1 = arith.constant 0 : i32
    return %c0_i32, %c0_i32_0 : i32, i32
  }
  func.func @transform_7(%arg0: i32, %arg1: memref<2xi32, #tpu.memory_space<smem>>) -> (i32, i32) {
    %c0_i32 = arith.constant 0 : i32
    %c0_i32_0 = arith.constant 0 : i32
    return %arg0, %c0_i32 : i32, i32
  }
  func.func @transform_8(%arg0: i32, %arg1: memref<2xi32, #tpu.memory_space<smem>>) -> (i32, i32, i32) {
    %c0_i32 = arith.constant 0 : i32
    %c0_i32_0 = arith.constant 0 : i32
    %c0_i32_1 = arith.constant 0 : i32
    return %arg0, %c0_i32, %c0_i32_0 : i32, i32, i32
  }
}

</mosaic_0001>

<bundles_post_ra>
// kernel: tpu_custom_call.1
= control target key start
LH: loop header
LB: loop body
LE: loop exit
PB: predicated region body
PF: predicated region fallthrough
CT: control target
= control target key end

     0   :  { %s1170_s30 = smov [#allocation3]   ;;  %s1334_s0 = inlined_call_operand.hbm [shape: s32[2], index: 0, kind: input, shape index: {}]   ;;  %s1335_s1 = inlined_call_operand.hbm [shape: f32[32,128], index: 1, kind: input, shape index: {}]   ;;  %s1336_s2 = inlined_call_operand.vmem [shape: f32[1,128], index: 2, kind: input, shape index: {}]   ;;  %s1337_s3 = inlined_call_operand.vmem [shape: f32[1,128], index: 3, kind: input, shape index: {}]   ;;  %s1338_s4 = inlined_call_operand.hbm [shape: bf16[128,256], index: 4, kind: input, shape index: {}]   ;;  %s1339_s5 = inlined_call_operand.vmem [shape: f32[1,256], index: 5, kind: input, shape index: {}]   ;;  %s1340_s6 = inlined_call_operand.hbm [shape: bf16[384,128], index: 6, kind: input, shape index: {}]   ;;  %s1341_s7 = inlined_call_operand.vmem [shape: f32[1,128], index: 7, kind: input, shape index: {}]   ;;  %s1342_s8 = inlined_call_operand.hbm [shape: bf16[32,128], index: 8, kind: output, shape index: {0}]   ;;  %s1343_s9 = inlined_call_operand.hbm [shape: f32[1,2,128], index: 9, kind: output, shape index: {1}]  }
   0x1   :  { %16 = dma.hbm_to_smem %s1334_s0, 16, %s1170_s30, [#allocation2] }
   0x2   :  { %1160 = dma.done.wait [#allocation2], 16 }
   0x3   :  { %1161 = vsyncadd [#allocation2], 4294967280 }
   0x4   :  { %18 = sfence }
   0x5   :  { %19 = vsyncpa [#allocation5], 0 }
   0x6   :  { %20 = vsyncpa [#allocation8], 0 }
   0x7   :  { %21 = vsyncpa [#allocation6], 0 }
   0x8   :  { %22 = vsyncpa [#allocation12], 0  ;;  %s1171_s12 = smov [#allocation7]   ;;  %s1172_s14 = smov [#allocation4]  }
   0x9   :  { %s44_s13 = sshll.u32 %s1171_s12, 4  ;;  %s28_s15 = sshll.u32 %s1172_s14, 4  ;;  %s45_s13 = int_to_ptr.vmem [resolvable:$true] %s44_s13  ;;  %s29_s15 = int_to_ptr.vmem [resolvable:$true] %s28_s15 }
   0xa   :  { %s1068_s16 = scalar_lea.vmem %s45_s13, 2048  ;;  %p1073_p1 = scmp.lt.s32.totalorder %s45_s13, %s45_s13 }
   0xb   :  { %p1069_p0 = scmp.ne.s32.totalorder %s45_s13, %s1068_s16  ;;  %p1074_p2 = scmp.lt.s32.totalorder %s1068_s16, %s1068_s16 }
   0xd   :  { %p1075_p3 = por %p1074_p2, %p1073_p1 }
   0xf   :  { %p1076_p4 = pnand %p1075_p3, %p1069_p0 }
  0x11   :  { %1079 = shalt.err (!%p1076_p4)
}
  0x12   :  { %s1173_s0 = smov 128   ;;  %s1174_s17 = smov 8  }
  0x13   :  { %50 = dma.hbm_to_vmem [thread:$0]  %s1338_s4, 2048, %s45_s13, [#allocation8], %s1173_s0, %s1173_s0, %s1174_s17  }
  0x14   :  { %s1088_s20 = scalar_lea.vmem %s29_s15, 512  ;;  %p1093_p6 = scmp.lt.s32.totalorder %s29_s15, %s29_s15 }
  0x15   :  { %p1089_p5 = scmp.ne.s32.totalorder %s29_s15, %s1088_s20  ;;  %p1094_p7 = scmp.lt.s32.totalorder %s1088_s20, %s1088_s20 }
  0x17   :  { %p1095_p8 = por %p1094_p7, %p1093_p6 }
  0x19   :  { %p1096_p9 = pnand %p1095_p8, %p1089_p5 }
  0x1b   :  { %1099 = shalt.err (!%p1096_p9)
}
  0x1c   :  { %34 = dma.hbm_to_vmem [thread:$0]  %s1335_s1, 512, %s29_s15, [#allocation5], %s1173_s0, %s1173_s0, %s1174_s17  }
  0x1d   :  { %s1175_s23 = smov [#allocation9]  }
  0x1e   :  { %s58_s24 = sshll.u32 %s1175_s23, 4  ;;  %s59_s24 = int_to_ptr.vmem [resolvable:$true] %s58_s24 }
  0x1f   :  { %s1108_s25 = scalar_lea.vmem %s59_s24, 3072  ;;  %p1113_p11 = scmp.lt.s32.totalorder %s59_s24, %s59_s24 }
  0x20   :  { %p1109_p10 = scmp.ne.s32.totalorder %s59_s24, %s1108_s25  ;;  %p1114_p12 = scmp.lt.s32.totalorder %s1108_s25, %s1108_s25 }
  0x22   :  { %p1115_p13 = por %p1114_p12, %p1113_p11 }
  0x24   :  { %p1116_p0 = pnand %p1115_p13, %p1109_p10 }
  0x26   :  { %1119 = shalt.err (!%p1116_p0)
}
  0x27   :  { %s1176_s4 = smov 64   ;;  %s1177_s26 = smov 4  }
  0x28   :  { %64 = dma.hbm_to_vmem [thread:$0]  %s1340_s6, 3072, %s59_s24, [#allocation8], %s1176_s4, %s1176_s4, %s1177_s26  }
  0x29   :  { %1162 = dma.done.wait [#allocation5], 512  }
  0x2a   :  { %1163 = vsyncadd [#allocation5], 4294966784 }
  0x2b   :  { %1164 = dma.done.wait [#allocation8], 5120  }
  0x2c   :  { %1165 = vsyncadd [#allocation8], 4294962176  ;;  %v77_v0 = vlaneseq  ;;  %v1178_v1 = vmov 0   ;;  %s81_s1 = sld [smem:[#allocation3]]  ;;  %v1179_v6 = vmov 0.0   ;;  %v98_v14 = vld [vmem:[#allocation4] sm:$0xff] }
  0x2d   :  { %968 = vset.pattern.permute.xlu0 %v1178_v1  ;;  %979 = vset.pattern.permute.xlu1 %v1178_v1  ;;  %s816_s29 = sld [smem:[#allocation3 + $0x1]]  ;;  %v100_v19 = vld [vmem:[#allocation4 + $0x10] sm:$0xff]  ;;  %v99_v20 = vld [vmem:[#allocation4 + $0x8] sm:$0xff]  ;;  %v101_v25 = vld [vmem:[#allocation4 + $0x18] sm:$0xff]  ;;  %v1180_v27 = vmov 1  }
  0x2e   :  { %v1250_v2 = vshrl.u32 %v77_v0, 7  ;;  %335 = vmatprep.mubr.bf16.mxu0 %v1178_v1  ;;  %v980_v28 = vld [vmem:[#allocation7 + $0x74] ss:$8 sps:$4 sm:$0xff]   ;;  %v982_v29 = vld [vmem:[#allocation7 + $0x70] ss:$8 sps:$4 sm:$0xff]  }
  0x2f   :  { %303 = vmatprep.subr.bf16.mxu0 %v980_v28  ;;  %v983_v46 = vld [vmem:[#allocation7 + $0x64] ss:$8 sps:$4 sm:$0xff]   ;;  %v985_v47 = vld [vmem:[#allocation7 + $0x60] ss:$8 sps:$4 sm:$0xff]   ;;  %v986_v48 = vld [vmem:[#allocation7 + $0x54] ss:$8 sps:$4 sm:$0xff]  }
  0x30   :  { %v1254_v3 = vadd.s32 8, %v1250_v2  ;;  %304 = vmatpush1.bf16.msra.mxu0 %v982_v29  ;;  %v988_v49 = vld [vmem:[#allocation7 + $0x50] ss:$8 sps:$4 sm:$0xff]   ;;  %v989_v50 = vld [vmem:[#allocation7 + $0x44] ss:$8 sps:$4 sm:$0xff]   ;;  %vm393_vm4 = vcmp.ge.s32.totalorder %v1250_v2, 1 }
  0x31   :  { %305 = vmatprep.subr.bf16.mxu0 %v983_v46  ;;  %v991_v51 = vld [vmem:[#allocation7 + $0x40] ss:$8 sps:$4 sm:$0xff]   ;;  %v992_v52 = vld [vmem:[#allocation7 + $0x34] ss:$8 sps:$4 sm:$0xff]   ;;  %v994_v53 = vld [vmem:[#allocation7 + $0x30] ss:$8 sps:$4 sm:$0xff]  }
  0x32   :  { %v82_v4 = vstv %s81_s1  ;;  %v395_v54 = vsel %vm393_vm4, 1, %v1178_v1  ;;  %v995_v55 = vld [vmem:[#allocation7 + $0x24] ss:$8 sps:$4 sm:$0xff]   ;;  %v997_v56 = vld [vmem:[#allocation7 + $0x20] ss:$8 sps:$4 sm:$0xff]   ;;  %vm423_vm5 = vcmp.lt.s32.totalorder %v1254_v3, 15 }
  0x33   :  { %vm83_vm0 = vcmp.lt.s32.totalorder %v1250_v2, %v82_v4  ;;  %vm84_vm1 = vcmp.lt.s32.totalorder %v1254_v3, %v82_v4  ;;  %v91_v5 = vstv %s816_s29  ;;  %v998_v57 = vld [vmem:[#allocation7 + $0x14] ss:$8 sps:$4 sm:$0xff]   ;;  %v1000_v58 = vld [vmem:[#allocation7 + $0x10] ss:$8 sps:$4 sm:$0xff]   ;;  %v1001_v59 = vld [vmem:[#allocation7 + $0x4] ss:$8 sps:$4 sm:$0xff]  }
  0x34   :  { %v814_v7 = vsel %vm83_vm0, 1.0, %v1179_v6  ;;  %v815_v8 = vsel %vm84_vm1, 1.0, %v1179_v6  ;;  %vm92_vm2 = vcmp.lt.s32.totalorder %v1250_v2, %v91_v5  ;;  %vm93_vm3 = vcmp.lt.s32.totalorder %v1254_v3, %v91_v5  ;;  %306 = vmatpush1.bf16.msra.mxu0 %v985_v47  ;;  %v1003_v60 = vld [vmem:[#allocation7] ss:$8 sps:$4 sm:$0xff]   ;;  %v1019_v46 = vld [vmem:[#allocation9 + $0x50] sm:$0xff]  }
  0x35   :  { %v969_v9 = vpack.i.bf16 %v815_v8, %v814_v7  ;;  %v817_v10 = vsel %vm92_vm2, 1.0, %v1179_v6  ;;  %v818_v11 = vsel %vm93_vm3, 1.0, %v1179_v6  ;;  %307 = vmatprep.subr.bf16.mxu0 %v986_v48  ;;  %v425_v61 = vsel %vm423_vm5, 1, %v1178_v1  ;;  %v1020_v47 = vld [vmem:[#allocation9 + $0x90] sm:$0xff]  }
  0x36   :  { %v974_v12 = vpack.i.bf16 %v818_v11, %v817_v10  ;;  %v1021_v48 = vld [vmem:[#allocation9 + $0x10] sm:$0xff]   ;;  %vm417_vm8 = vcmp.lt.s32.totalorder %v1250_v2, 7  ;;  %vm388_vm10 = vcmp.lt.s32.totalorder %v1250_v2, 1 }
  0x37   :  { %970 = vperm.xlu0 %968, %v969_v9  }
  0x38   :  { %308 = vmatpush1.bf16.msra.mxu0 %v988_v49  ;;  %v1022_v49 = vld [vmem:[#allocation9 + $0x48] sm:$0xff]  }
  0x39   :  { %309 = vmatprep.subr.bf16.mxu0 %v989_v50  ;;  %v1023_v50 = vld [vmem:[#allocation9 + $0x88] sm:$0xff]  }
  0x3b   :  { %975 = vperm.xlu0 %968, %v974_v12  }
  0x3c   :  { %310 = vmatpush1.bf16.msra.mxu0 %v991_v51  ;;  %v1024_v51 = vld [vmem:[#allocation9 + $0x8] sm:$0xff]  }
  0x3d   :  { %311 = vmatprep.subr.bf16.mxu0 %v992_v52  ;;  %v1025_v52 = vld [vmem:[#allocation9 + $0x40] sm:$0xff]  }
  0x40   :  { %312 = vmatpush1.bf16.msra.mxu0 %v994_v53  ;;  %v1026_v53 = vld [vmem:[#allocation9 + $0x80] sm:$0xff]  }
  0x41   :  { %313 = vmatprep.subr.bf16.mxu0 %v995_v55  ;;  %v219_v55 = vsub.s32 1, %v1250_v2 }
  0x44   :  { %314 = vmatpush1.bf16.msra.mxu0 %v997_v56  ;;  %v211_v56 = vld [vmem:[%s1339_s5] sm:$0x3] }
  0x45   :  { %315 = vmatprep.subr.bf16.mxu0 %v998_v57  ;;  %v220_v57 = vrot.slane %v211_v56, %v219_v55 }
  0x48   :  { %316 = vmatpush1.bf16.msra.mxu0 %v1000_v58 }
  0x49   :  { %317 = vmatprep.subr.bf16.mxu0 %v1001_v59 }
  0x4c   :  { %318 = vmatpush1.bf16.msra.mxu0 %v1003_v60 }
  0xb2   :  { %v971_v13 = vpop.permute.xlu0 %970 }
  0xb3   :  { %v972_v15 = vunpack.i.l.bf16 %v971_v13  ;;  %v973_v16 = vunpack.i.h.bf16 %v971_v13 }
  0xb5   :  { %v122_v17 = vmul.f32 %v972_v15, %v98_v14  ;;  %v123_v24 = vmul.f32 %v973_v16, %v99_v20  ;;  %v819_v14 = vld [vmem:[%s1336_s2] ss:$0 sm:$0xff] }
  0xb6   :  { %v976_v18 = vpop.permute.xlu0 %975 }
  0xb7   :  { %v977_v21 = vunpack.i.l.bf16 %v976_v18  ;;  %126 = vadd.xlane.f32.xlu1 %v122_v17  ;;  %v978_v22 = vunpack.i.h.bf16 %v976_v18  ;;  %v820_v18 = vld [vmem:[%s1337_s3] ss:$0 sm:$0xff] }
  0xb9   :  { %v124_v23 = vmul.f32 %v977_v21, %v100_v19  ;;  %v125_v26 = vmul.f32 %v978_v22, %v101_v25 }
  0xbb   :  { %130 = vadd.xlane.f32.xlu0 %v124_v23  ;;  %128 = vadd.xlane.f32.xlu1 %v123_v24 }
  0xbf   :  { %132 = vadd.xlane.f32.xlu1 %v125_v26 }
  0xd1   :  { %401 = vperm.xlu0 %968, %v1180_v27  }
 0x140   :  { %v127_v30 = vpop.xlane.xlu1 %126 }
 0x141   :  { %v135_v31 = vmul.f32 0.0078125, %v127_v30 }
 0x143   :  { %v1260_v32 = vsub.f32 %v122_v17, %v135_v31 }
 0x144   :  { %v131_v33 = vpop.xlane.xlu0 %130  ;;  %v129_v34 = vpop.xlane.xlu1 %128 }
 0x145   :  { %v137_v35 = vmul.f32 0.0078125, %v131_v33  ;;  %v136_v36 = vmul.f32 0.0078125, %v129_v34  ;;  %v143_v37 = vmul.f32 %v1260_v32, %v1260_v32  ;;  %v1005_v33 = vld [vmem:[#allocation9 + $0xb8] sm:$0xff]  }
 0x146   :  { %v1006_v34 = vld [vmem:[#allocation9 + $0x38] sm:$0xff]   ;;  %935 = vmatprep.subr.bf16.mxu0 %v1005_v33 }
 0x147   :  { %v1264_v38 = vsub.f32 %v123_v24, %v136_v36  ;;  %147 = vadd.xlane.f32.xlu1 %v143_v37  ;;  %v1266_v40 = vsub.f32 %v124_v23, %v137_v35  ;;  %v1007_v35 = vld [vmem:[#allocation9 + $0x70] sm:$0xff]  }
 0x148   :  { %v133_v39 = vpop.xlane.xlu1 %132  ;;  %v1008_v36 = vld [vmem:[#allocation9 + $0xb0] sm:$0xff]  }
 0x149   :  { %v138_v41 = vmul.f32 0.0078125, %v133_v39  ;;  %v144_v42 = vmul.f32 %v1264_v38, %v1264_v38  ;;  %v145_v44 = vmul.f32 %v1266_v40, %v1266_v40  ;;  %v1009_v37 = vld [vmem:[#allocation9 + $0x30] sm:$0xff]   ;;  %v1012_v39 = vld [vmem:[#allocation9 + $0x28] sm:$0xff]  }
 0x14b   :  { %149 = vadd.xlane.f32.xlu1 %v144_v42  ;;  %v1270_v43 = vsub.f32 %v125_v26, %v138_v41  ;;  %v1014_v41 = vld [vmem:[#allocation9 + $0xa0] sm:$0xff]  }
 0x14c   :  { %v1015_v42 = vld [vmem:[#allocation9 + $0x20] sm:$0xff]  }
 0x14d   :  { %v146_v45 = vmul.f32 %v1270_v43, %v1270_v43 }
 0x14f   :  { %151 = vadd.xlane.f32.xlu1 %v145_v44  ;;  %v1017_v44 = vld [vmem:[#allocation9 + $0x98] sm:$0xff]  }
 0x153   :  { %153 = vadd.xlane.f32.xlu1 %v146_v45  ;;  %v1018_v45 = vld [vmem:[#allocation9 + $0x18] sm:$0xff]  }
 0x164   :  { %398 = vperm.xlu1 %979, %v395_v54   ;;  %v1027_v54 = vld [vmem:[#allocation9] sm:$0xff]  }
 0x168   :  { %427 = vperm.xlu1 %979, %v1180_v27  }
 0x16c   :  { %430 = vperm.xlu1 %979, %v425_v61  }
 0x1d0   :  { %v148_v62 = vpop.xlane.xlu1 %147 }
 0x1d1   :  { %v155_v63 = vmul.f32 0.0078125, %v148_v62 }
 0x1d3   :  { %v159_v0 = vadd.f32 1e-05, %v155_v63 }
 0x1d4   :  { %v150_v4 = vpop.xlane.xlu1 %149 }
 0x1d5   :  { %1028 = vrsqrt.f32 %v159_v0  ;;  %v156_v5 = vmul.f32 0.0078125, %v150_v4 }
 0x1d7   :  { %v160_v6 = vadd.f32 1e-05, %v156_v5 }
 0x1d8   :  { %v152_v7 = vpop.xlane.xlu1 %151 }
 0x1d9   :  { %1030 = vrsqrt.f32 %v160_v6  ;;  %v157_v8 = vmul.f32 0.0078125, %v152_v7 }
 0x1db   :  { %v161_v9 = vadd.f32 1e-05, %v157_v8 }
 0x1dc   :  { %v154_v10 = vpop.xlane.xlu1 %153 }
 0x1dd   :  { %1032 = vrsqrt.f32 %v161_v9  ;;  %v158_v11 = vmul.f32 0.0078125, %v154_v10 }
 0x1df   :  { %v162_v12 = vadd.f32 1e-05, %v158_v11 }
 0x1e1   :  { %1034 = vrsqrt.f32 %v162_v12 }
 0x1e2   :  { %v1029_v3 = vpop.eup %1028 }
 0x1e3   :  { %v167_v13 = vmul.f32 %v1029_v3, %v1260_v32  ;;  %v1004_v32 = vld [vmem:[#allocation9 + $0x78] sm:$0xff]  }
 0x1e4   :  { %897 = vmatprep.subr.bf16.mxu1 %v1004_v32 }
 0x1e5   :  { %v178_v17 = vmul.f32 %v819_v14, %v167_v13  ;;  %898 = vmatpush3.bf16.msra.mxu1 %v1006_v34 }
 0x1e6   :  { %v1031_v15 = vpop.eup %1030  ;;  %899 = vmatprep.subr.bf16.mxu1 %v1007_v35 }
 0x1e7   :  { %v168_v16 = vmul.f32 %v1031_v15, %v1264_v38  ;;  %v189_v21 = vadd.f32 %v820_v18, %v178_v17  ;;  %v1011_v38 = vld [vmem:[#allocation9 + $0xa8] sm:$0xff]  }
 0x1e9   :  { %v179_v19 = vmul.f32 %v819_v14, %v168_v16  ;;  %900 = vmatpush3.bf16.msra.mxu1 %v1009_v37 }
 0x1ea   :  { %v1033_v20 = vpop.eup %1032 }
 0x1eb   :  { %v190_v22 = vadd.f32 %v820_v18, %v179_v19  ;;  %v169_v23 = vmul.f32 %v1033_v20, %v1266_v40  ;;  %v1013_v40 = vld [vmem:[#allocation9 + $0x60] sm:$0xff]   ;;  %v399_v20 = vpop.permute.xlu1 %398 }
 0x1ec   :  { %vm403_vm11 = vcmp.eq.s32.totalorder %v399_v20, 1 }
 0x1ed   :  { %v193_v24 = vpack.c.bf16 %v190_v22, %v189_v21  ;;  %v180_v27 = vmul.f32 %v819_v14, %v169_v23 }
 0x1ee   :  { %v1035_v25 = vpop.eup %1034 }
 0x1ef   :  { %336 = vmatmul.mubr.bf16.vlgmr.msra.gmra.mxu0 %v193_v24  ;;  %v170_v26 = vmul.f32 %v1035_v25, %v1270_v43  ;;  %v191_v29 = vadd.f32 %v820_v18, %v180_v27  ;;  %v1016_v43 = vld [vmem:[#allocation9 + $0x58] sm:$0xff]   ;;  %v428_v23 = vpop.permute.xlu1 %427 }
 0x1f0   :  { %345 = vmatprep.mubr.bf16.mxu0 %v1178_v1  ;;  %936 = vmatpush3.bf16.msra.mxu0 %v1005_v33  ;;  %v1010_v1 = vld [vmem:[#allocation9 + $0x68] sm:$0xff]   ;;  %vm432_vm6 = vcmp.eq.s32.totalorder %v428_v23, 1 }
 0x1f1   :  { %v181_v28 = vmul.f32 %v819_v14, %v170_v26  ;;  %937 = vmatprep.subr.bf16.mxu0 %v1008_v36  ;;  %901 = vmatprep.subr.bf16.mxu1 %v1010_v1 }
 0x1f2   :  { %902 = vmatpush3.bf16.msra.mxu1 %v1012_v39 }
 0x1f3   :  { %v192_v30 = vadd.f32 %v820_v18, %v181_v28  ;;  %903 = vmatprep.subr.bf16.mxu1 %v1013_v40  ;;  %v215_v18 = vsub.s32 0, %v1250_v2  ;;  %v431_v32 = vpop.permute.xlu1 %430 }
 0x1f4   :  { %938 = vmatpush3.bf16.msra.mxu0 %v1008_v36  ;;  %vm433_vm7 = vcmp.eq.s32.totalorder %v431_v32, 1 }
 0x1f5   :  { %v194_v31 = vpack.c.bf16 %v192_v30, %v191_v29  ;;  %939 = vmatprep.subr.bf16.mxu0 %v1011_v38  ;;  %v216_v22 = vrot.slane %v211_v56, %v215_v18  ;;  %vm1297_vm9 = vmpackc.low %vm433_vm7, %vm432_vm6 }
 0x1f6   :  { %904 = vmatpush3.bf16.msra.mxu1 %v1015_v42 }
 0x1f7   :  { %346 = vmatmul.mubr.bf16.gmra.mxu0 %v194_v31  ;;  %905 = vmatprep.subr.bf16.mxu1 %v1016_v43 }
 0x1f8   :  { %940 = vmatpush3.bf16.msra.mxu0 %v1011_v38 }
 0x1f9   :  { %941 = vmatprep.subr.bf16.mxu0 %v1014_v41 }
 0x1fa   :  { %906 = vmatpush3.bf16.msra.mxu1 %v1018_v45  ;;  %v402_v45 = vpop.permute.xlu0 %401 }
 0x1fb   :  { %907 = vmatprep.subr.bf16.mxu1 %v1019_v46  ;;  %vm404_vm12 = vcmp.eq.s32.totalorder %v402_v45, 1 }
 0x1fc   :  { %942 = vmatpush3.bf16.msra.mxu0 %v1014_v41  ;;  %vm866_vm13 = vmpackc.low %vm404_vm12, %vm403_vm11 }
 0x1fd   :  { %943 = vmatprep.subr.bf16.mxu0 %v1017_v44 }
 0x1fe   :  { %908 = vmatpush3.bf16.msra.mxu1 %v1021_v48 }
 0x1ff   :  { %909 = vmatprep.subr.bf16.mxu1 %v1022_v49 }
 0x200   :  { %944 = vmatpush3.bf16.msra.mxu0 %v1017_v44 }
 0x201   :  { %945 = vmatprep.subr.bf16.mxu0 %v1020_v47 }
 0x202   :  { %910 = vmatpush3.bf16.msra.mxu1 %v1024_v51 }
 0x203   :  { %911 = vmatprep.subr.bf16.mxu1 %v1025_v52 }
 0x204   :  { %946 = vmatpush3.bf16.msra.mxu0 %v1020_v47 }
 0x205   :  { %947 = vmatprep.subr.bf16.mxu0 %v1023_v50 }
 0x206   :  { %912 = vmatpush3.bf16.msra.mxu1 %v1027_v54 }
 0x208   :  { %948 = vmatpush3.bf16.msra.mxu0 %v1023_v50 }
 0x209   :  { %949 = vmatprep.subr.bf16.mxu0 %v1026_v53 }
 0x20c   :  { %950 = vmatpush3.bf16.msra.mxu0 %v1026_v53 }
 0x2af   :  { %v337_v58 = vpop.f32.mrf.mxu0 }
 0x2b0   :  { %v338_v25 = vadd.f32 %v337_v58, %v216_v22 }
 0x2b1   :  { %v339_v59 = vpop.f32.mrf.mxu0 }
 0x2b2   :  { %v340_v60 = vadd.f32 %v339_v59, %v220_v57 }
 0x2b3   :  { %v341_v61 = vpop.f32.mrf.mxu0 }
 0x2b4   :  { %v837_v62 = vmul.f32 -1.442695, %v340_v60  ;;  %v342_v26 = vadd.f32 %v341_v61, %v216_v22 }
 0x2b5   :  { %v343_v63 = vpop.f32.mrf.mxu0 }
 0x2b6   :  { %1036 = vpow2.f32 %v837_v62  ;;  %v344_v0 = vadd.f32 %v343_v63, %v220_v57 }
 0x2b7   :  { %v347_v4 = vpop.f32.mrf.mxu0 }
 0x2b8   :  { %v838_v5 = vmul.f32 -1.442695, %v344_v0  ;;  %v348_v30 = vadd.f32 %v347_v4, %v216_v22  ;;  %v841_v4 = vld [vmem:[%s1341_s7] ss:$0 sm:$0xff]  ;;  %s1181_s7 = smov [#allocation10]  }
 0x2b9   :  { %v349_v6 = vpop.f32.mrf.mxu0  ;;  %s787_s13 = sshll.u32 %s1181_s7, 4  ;;  %s788_s13 = int_to_ptr.vmem [resolvable:$true] %s787_s13 }
 0x2ba   :  { %1038 = vpow2.f32 %v838_v5  ;;  %v350_v7 = vadd.f32 %v349_v6, %v220_v57  ;;  %s1120_s14 = scalar_lea.vmem %s788_s13, 256  ;;  %p1125_p2 = scmp.lt.s32.totalorder %s788_s13, %s788_s13 }
 0x2bb   :  { %v351_v8 = vpop.f32.mrf.mxu0  ;;  %p1121_p1 = scmp.ne.s32.totalorder %s788_s13, %s1120_s14  ;;  %p1126_p3 = scmp.lt.s32.totalorder %s1120_s14, %s1120_s14 }
 0x2bc   :  { %v839_v9 = vmul.f32 -1.442695, %v350_v7  ;;  %v352_v36 = vadd.f32 %v351_v8, %v216_v22 }
 0x2bd   :  { %v353_v10 = vpop.f32.mrf.mxu0  ;;  %p1127_p4 = por %p1126_p3, %p1125_p2 }
 0x2be   :  { %1040 = vpow2.f32 %v839_v9  ;;  %v354_v11 = vadd.f32 %v353_v10, %v220_v57 }
 0x2bf   :  { %p1128_p5 = pnand %p1127_p4, %p1121_p1 }
 0x2c0   :  { %v840_v12 = vmul.f32 -1.442695, %v354_v11 }
 0x2c2   :  { %1042 = vpow2.f32 %v840_v12 }
 0x2c3   :  { %v1037_v3 = vpop.eup %1036 }
 0x2c4   :  { %v368_v13 = vadd.f32 1.0, %v1037_v3 }
 0x2c6   :  { %1044 = vrcp.f32 %v368_v13 }
 0x2c7   :  { %v1039_v14 = vpop.eup %1038 }
 0x2c8   :  { %v369_v15 = vadd.f32 1.0, %v1039_v14 }
 0x2ca   :  { %1046 = vrcp.f32 %v369_v15 }
 0x2cb   :  { %v1041_v16 = vpop.eup %1040 }
 0x2cc   :  { %v370_v17 = vadd.f32 1.0, %v1041_v16 }
 0x2ce   :  { %1048 = vrcp.f32 %v370_v17 }
 0x2cf   :  { %v1043_v19 = vpop.eup %1042 }
 0x2d0   :  { %v371_v21 = vadd.f32 1.0, %v1043_v19 }
 0x2d2   :  { %1050 = vrcp.f32 %v371_v21 }
 0x2d3   :  { %v1045_v24 = vpop.eup %1044 }
 0x2d4   :  { %v380_v28 = vmul.f32 %v1045_v24, %v338_v25 }
 0x2d6   :  { %v413_v37 = vrot.slane %v380_v28, 1  ;;  %v384_v46 = vrot.slane %v380_v28, 7 }
 0x2d7   :  { %v1047_v27 = vpop.eup %1046 }
 0x2d8   :  { %v381_v29 = vmul.f32 %v1047_v27, %v342_v26 }
 0x2da   :  { %v411_v31 = vpack.c.bf16 %v381_v29, %v380_v28  ;;  %v414_v34 = vrot.slane %v381_v29, 1  ;;  %v385_v40 = vrot.slane %v381_v29, 7 }
 0x2db   :  { %v1049_v33 = vpop.eup %1048 }
 0x2dc   :  { %671 = vmatprep.mubr.bf16.mxu1 %v411_v31  ;;  %v382_v35 = vmul.f32 %v1049_v33, %v348_v30  ;;  %v420_v43 = vsel %vm417_vm8, %v413_v37, %v414_v34  ;;  %v391_v51 = vsel %vm388_vm10, %v384_v46, %v385_v40 }
 0x2de   :  { %v415_v1 = vrot.slane %v382_v35, 1  ;;  %v386_v56 = vrot.slane %v382_v35, 7 }
 0x2df   :  { %v1051_v38 = vpop.eup %1050 }
 0x2e0   :  { %v383_v39 = vmul.f32 %v1051_v38, %v352_v36  ;;  %v419_v42 = vsel %vm417_vm8, %v414_v34, %v415_v1  ;;  %v390_v58 = vsel %vm388_vm10, %v385_v40, %v386_v56 }
 0x2e1   :  { %v873_v44 = vpack.c.bf16 %v419_v42, %v420_v43 }
 0x2e2   :  { %v416_v47 = vrot.slane %v383_v39, 1  ;;  %v387_v48 = vrot.slane %v383_v39, 7  ;;  %v412_v55 = vpack.c.bf16 %v383_v39, %v382_v35 }
 0x2e3   :  { %951 = vmatprep.mubr.msk.bf16.mxu0 %vm1297_vm9, %v873_v44 }
 0x2e4   :  { %v418_v49 = vsel %vm417_vm8, %v415_v1, %v416_v47  ;;  %v421_v50 = vsel %vm417_vm8, %v416_v47, %v413_v37  ;;  %v392_v52 = vsel %vm388_vm10, %v387_v48, %v384_v46  ;;  %v389_v57 = vsel %vm388_vm10, %v386_v56, %v387_v48 }
 0x2e5   :  { %v867_v53 = vpack.c.bf16 %v391_v51, %v392_v52  ;;  %v876_v54 = vpack.c.bf16 %v421_v50, %v418_v49  ;;  %v870_v59 = vpack.c.bf16 %v389_v57, %v390_v58 }
 0x2e7   :  { %868 = vmatmul.mubr.msk.bf16.vlgmr.msra.gmra.mxu1 %vm866_vm13, %v867_v53  ;;  %952 = vmatmul.mubr.msk.bf16.vlgmr.msra.gmra.mxu0 %vm1297_vm9, %v876_v54 }
 0x2e8   :  { %679 = vmatprep.mubr.bf16.mxu1 %v412_v55 }
 0x2ef   :  { %871 = vmatmul.mubr.msk.bf16.gmra.mxu1 %vm866_vm13, %v870_v59 }
 0x3a7   :  { %v913_v60 = vpop.f32.mrf.mxu1  ;;  %v953_v61 = vpop.f32.mrf.mxu0 }
 0x3a9   :  { %v914_v62 = vpop.f32.mrf.mxu1  ;;  %v722_v63 = vpop.f32.mrf.mxu0 }
 0x3aa   :  { %v915_v0 = vadd.f32 %v914_v62, %v913_v60 }
 0x3ab   :  { %v916_v5 = vpop.f32.mrf.mxu1  ;;  %v954_v6 = vpop.f32.mrf.mxu0 }
 0x3ac   :  { %v674_v8 = vadd.f32 %v915_v0, %v841_v4 }
 0x3ad   :  { %v917_v7 = vpop.f32.mrf.mxu1  ;;  %v725_v2 = vpop.f32.mrf.mxu0 }
 0x3ae   :  { %v918_v9 = vadd.f32 %v917_v7, %v916_v5  ;;  %v723_v3 = vadd.f32 %v722_v63, %v674_v8 }
 0x3af   :  { %v919_v10 = vpop.f32.mrf.mxu1 }
 0x3b0   :  { %v677_v11 = vadd.f32 %v918_v9, %v841_v4  ;;  %v766_v22 = vmul.f32 %v723_v3, %v723_v3 }
 0x3b1   :  { %v920_v12 = vpop.f32.mrf.mxu1 }
 0x3b2   :  { %v726_v13 = vadd.f32 %v725_v2, %v677_v11  ;;  %v921_v14 = vadd.f32 %v920_v12, %v919_v10 }
 0x3b3   :  { %v922_v15 = vpop.f32.mrf.mxu1 }
 0x3b4   :  { %v889_v16 = vpack.c.bf16 %v726_v13, %v723_v3  ;;  %v682_v17 = vadd.f32 %v921_v14, %v841_v4  ;;  %v767_v19 = vmul.f32 %v726_v13, %v726_v13  ;;  %v757_v23 = vadd.f32 %v726_v13, %v723_v3 }
 0x3b5   :  { %v923_v18 = vpop.f32.mrf.mxu1 }
 0x3b6   :  { %890 = vst [vmem:[#allocation10] sm:$0xff] %v889_v16   ;;  %v731_v20 = vadd.f32 %v953_v61, %v682_v17  ;;  %v924_v21 = vadd.f32 %v923_v18, %v922_v15  ;;  %v770_v26 = vadd.f32 %v767_v19, %v766_v22 }
 0x3b8   :  { %v768_v24 = vmul.f32 %v731_v20, %v731_v20  ;;  %v685_v25 = vadd.f32 %v924_v21, %v841_v4  ;;  %v758_v27 = vadd.f32 %v757_v23, %v731_v20 }
 0x3ba   :  { %v734_v28 = vadd.f32 %v954_v6, %v685_v25  ;;  %v771_v29 = vadd.f32 %v770_v26, %v768_v24 }
 0x3bc   :  { %v759_v30 = vadd.f32 %v758_v27, %v734_v28  ;;  %v769_v31 = vmul.f32 %v734_v28, %v734_v28  ;;  %v894_v32 = vpack.c.bf16 %v734_v28, %v731_v20 }
 0x3be   :  { %v760_v33 = vrot.slane %v759_v30, 4  ;;  %v772_v34 = vadd.f32 %v771_v29, %v769_v31  ;;  %896 = vst [vmem:[#allocation10 + $0x8] sm:$0xff] %v894_v32  }
 0x3bf   :  { %1131 = shalt.err (!%p1128_p5)
}
 0x3c0   :  { %793 = dma.vmem_to_hbm [thread:$0]  %s788_s13, 256, %s1342_s8, [#allocation6], %s1176_s4, %s1176_s4, %s1177_s26   ;;  %v761_v35 = vadd.f32 %v760_v33, %v759_v30  ;;  %v773_v36 = vrot.slane %v772_v34, 4  ;;  %vm779_vm14 = vcmask 1040384  }
 0x3c1   :  { %s1182_s0 = smov [#allocation11]  }
 0x3c2   :  { %v762_v37 = vrot.slane %v761_v35, 2  ;;  %v774_v1 = vadd.f32 %v773_v36, %v772_v34  ;;  %s800_s17 = sshll.u32 %s1182_s0, 4  ;;  %s801_s17 = int_to_ptr.vmem [resolvable:$true] %s800_s17 }
 0x3c3   :  { %s1140_s18 = scalar_lea.vmem %s801_s17, 32  ;;  %p1145_p7 = scmp.lt.s32.totalorder %s801_s17, %s801_s17 }
 0x3c4   :  { %v763_v38 = vadd.f32 %v762_v37, %v761_v35  ;;  %v775_v39 = vrot.slane %v774_v1, 2  ;;  %p1141_p6 = scmp.ne.s32.totalorder %s801_s17, %s1140_s18  ;;  %p1146_p8 = scmp.lt.s32.totalorder %s1140_s18, %s1140_s18 }
 0x3c6   :  { %v764_v40 = vrot.slane %v763_v38, 1  ;;  %v776_v41 = vadd.f32 %v775_v39, %v774_v1  ;;  %p1147_p9 = por %p1146_p8, %p1145_p7 }
 0x3c8   :  { %v777_v42 = vrot.slane %v776_v41, 1  ;;  %v765_v43 = vadd.f32 %v764_v40, %v763_v38  ;;  %p1148_p10 = pnand %p1147_p9, %p1141_p6 }
 0x3ca   :  { %v778_v44 = vadd.f32 %v777_v42, %v776_v41 }
 0x3cc   :  { %v780_v45 = vsel %vm779_vm14, %v765_v43, %v778_v44 }
 0x3cd   :  { %781 = vst [vmem:[#allocation11] sm:$0x3] %v780_v45 }
 0x3ce   :  { %1151 = shalt.err (!%p1148_p10)
}
 0x3cf   :  { %803 = dma.vmem_to_hbm [thread:$0]  %s801_s17, 32, %s1343_s9, [#allocation12]  }
 0x3d0   :  { %1166 = dma.done.wait [#allocation6], 256  }
 0x3d1   :  { %1167 = vsyncadd [#allocation6], 4294967040 }
 0x3d2   :  { %1168 = dma.done.wait [#allocation12], 32  }
 0x3d3   :  { %1169 = vsyncadd [#allocation12], 4294967264 }
 0x3d4   :  { %810 = vsyncpa [#allocation5], 1 }
 0x3d5   :  { %811 = vsyncpa [#allocation8], 1 }
 0x3d6   :  { %812 = vsyncpa [#allocation6], 1 }
 0x3d7   :  { %813 = vsyncpa [#allocation12], 1 }

</bundles_post_ra>
